<compile_context>
chip_gen: v6e
topology: v6e:2x2x1
jax: 0.10.0
libtpu: 0.0.40
codegen_flags: <defaults>
</compile_context>

<pallas_src>
import jax
import jax.numpy as jnp
from jax.experimental import pallas as pl
from jax.experimental.pallas import tpu as pltpu


def cbow_kernel(hidden_ref, w_ref, b_ref, o_ref):
    # hidden_ref: (TB, E) bf16  context-summed embeddings for this batch tile
    # w_ref:      (E, V)  bf16  pre-transposed linear weight (K, N layout)
    # b_ref:      (1, V)  f32   linear bias
    # o_ref:      (TB, V)       log-softmax output (f32 or bf16)
    # Clean MXU push: (TB, E) x (E, V) -> (TB, V), f32 accumulation.
    logits = jnp.dot(hidden_ref[...], w_ref[...], preferred_element_type=jnp.float32)
    logits = logits + b_ref[...]
    # Numerically-stable log-softmax over the full vocab row (f32 math).
    m = jnp.max(logits, axis=-1, keepdims=True)
    shifted = logits - m
    lse = jnp.log(jnp.sum(jnp.exp(shifted), axis=-1, keepdims=True))
    o_ref[...] = (shifted - lse).astype(o_ref.dtype)


def prepare_cbow_params(linear_w, linear_b):
    """Precompute (once, outside the per-step path) the transposed bf16 weight
    and the 2-D f32 bias.  linear_w: (V, E), linear_b: (V,)."""
    V, E = linear_w.shape
    w_t = jnp.asarray(linear_w).T.astype(jnp.bfloat16)           # (E, V) bf16
    bias2d = jnp.asarray(linear_b).reshape(1, V).astype(jnp.float32)
    return w_t, bias2d


def _build_call(*, n_tiles, tb, E, V, Bp, out_dtype, vmem_limit, cost,
                single_buffer_resident):
    resident_kwargs = {}
    if single_buffer_resident:
        # Constant index_map -> the block never changes; one buffer is enough.
        resident_kwargs = dict(pipeline_mode=pl.Buffered(1))
    in_specs = [
        pl.BlockSpec((tb, E), lambda i: (i, 0)),                   # hidden tile (pipelined)
        pl.BlockSpec((E, V), lambda i: (0, 0), **resident_kwargs),  # weight resident
        pl.BlockSpec((1, V), lambda i: (0, 0), **resident_kwargs),  # bias resident
    ]
    return pl.pallas_call(
        cbow_kernel,
        out_shape=jax.ShapeDtypeStruct((Bp, V), out_dtype),
        grid_spec=pltpu.PrefetchScalarGridSpec(
            num_scalar_prefetch=0,
            grid=(n_tiles,),
            in_specs=in_specs,
            out_specs=pl.BlockSpec((tb, V), lambda i: (i, 0)),
        ),
        compiler_params=pltpu.CompilerParams(
            dimension_semantics=("parallel",),    # megacore split on v7x
            vmem_limit_bytes=vmem_limit,
        ),
        cost_estimate=cost,
    )


def cbow_forward(ctx_ids, embedding_table, w_t, bias2d, *, tb=256,
                 out_dtype=jnp.float32):
    """ctx_ids: (B, C) int32, embedding_table: (V, E) f32,
    w_t: (E, V) bf16 (from prepare_cbow_params), bias2d: (1, V) f32."""
    B, C = ctx_ids.shape
    E, V = w_t.shape

    # Glue in plain JAX (fused by XLA into a single gather+reduce pass).
    # Sum in f32 for accuracy, THEN cast to bf16 (MXU input dtype) so the
    # kernel reads half the bytes and skips the per-tile cast.
    hidden = jnp.take(embedding_table, ctx_ids, axis=0).sum(axis=1)   # (B, E) f32
    hidden = hidden.astype(jnp.bfloat16)                              # (B, E) bf16

    # Batch tile: multiple of 16 (bf16 (16,128) packing -> unmasked stores),
    # shrunk so the "parallel" grid has at least 2 steps (v7x: 2 TCs/chip).
    tb = max(16, (int(tb) // 16) * 16)
    half_b_rounded = 16 * pl.cdiv(pl.cdiv(B, 2), 16)
    tb = min(tb, max(16, half_b_rounded))
    n_tiles = pl.cdiv(B, tb)
    Bp = n_tiles * tb
    if Bp != B:
        hidden = jnp.pad(hidden, ((0, Bp - B), (0, 0)))

    out_itemsize = jnp.dtype(out_dtype).itemsize
    # Conservative (everything double-buffered) VMEM footprint + headroom,
    # capped well under v7x's 64 MiB per-TC VMEM.
    needed = (2 * tb * E * 2          # hidden tiles (bf16)
              + 2 * E * V * 2         # weight (bf16)
              + 2 * 8 * V * 4         # bias (sublane-padded f32)
              + 2 * tb * V * out_itemsize)  # output tiles
    vmem_limit = int(min(max(2 * needed, 16 * 1024 * 1024), 48 * 1024 * 1024))

    cost = pl.CostEstimate(
        flops=2 * Bp * E * V,
        transcendentals=Bp * V,                       # exp per logit
        bytes_accessed=Bp * E * 2 + E * V * 2 + V * 4 + Bp * V * out_itemsize,
    )

    common = dict(n_tiles=n_tiles, tb=tb, E=E, V=V, Bp=Bp, out_dtype=out_dtype,
                  vmem_limit=vmem_limit, cost=cost)
    try:
        out = _build_call(single_buffer_resident=True, **common)(hidden, w_t, bias2d)
    except Exception:
        # pipeline_mode=pl.Buffered(1) not supported by this JAX build:
        # fall back to default double buffering (correctness identical).
        out = _build_call(single_buffer_resident=False, **common)(hidden, w_t, bias2d)

    return out[:B]


if __name__ == "__main__":
    # Small, TPU-friendly shapes: batch=256 (2 parallel tiles of 128),
    # context=4, embed=128, vocab=128.
    B, C, E, V = 256, 4, 128, 128

    key = jax.random.PRNGKey(0)
    k_emb, k_w, k_b, k_ids = jax.random.split(key, 4)

    embedding_table = jax.random.normal(k_emb, (V, E), dtype=jnp.float32) * 0.1
    linear_w = jax.random.normal(k_w, (V, E), dtype=jnp.float32) * 0.1
    linear_b = jax.random.normal(k_b, (V,), dtype=jnp.float32) * 0.1
    ctx_ids = jax.random.randint(k_ids, (B, C), 0, V, dtype=jnp.int32)

    # Weight transpose / cast hoisted out of the per-forward path.
    w_t, bias2d = prepare_cbow_params(linear_w, linear_b)

    out = cbow_forward(ctx_ids, embedding_table, w_t, bias2d)
    out = jax.block_until_ready(out)

    # Pure-JAX reference.  The MXU multiplies bf16 inputs with f32
    # accumulation, so quantize the reference inputs the same way (tight
    # check) and also sanity-check against the full-f32 reference (loose).
    hidden_ref = jnp.take(embedding_table, ctx_ids, axis=0).sum(axis=1)
    h_q = hidden_ref.astype(jnp.bfloat16).astype(jnp.float32)
    w_q = linear_w.astype(jnp.bfloat16).astype(jnp.float32)
    logits_q = h_q @ w_q.T + linear_b
    ref_q = jax.nn.log_softmax(logits_q, axis=-1)
    logits_f32 = hidden_ref @ linear_w.T + linear_b
    ref_f32 = jax.nn.log_softmax(logits_f32, axis=-1)

    assert out.shape == (B, V)
    assert jnp.all(jnp.isfinite(out))
    assert jnp.allclose(out, ref_q, atol=1e-3, rtol=1e-3)
    assert jnp.allclose(out, ref_f32, atol=3e-2, rtol=3e-2)

    # TODO(synk): reference module's forward() is literally `pass` (returns
    # None); the canonical CBOW forward is implemented instead.
    print("KERNEL_OK")
</pallas_src>

<mosaic_0001>
module attributes {stable_mosaic.version = 11 : i64} {
  func.func @cbow_kernel(%arg0: i32, %arg1: memref<128x128xbf16, #tpu.memory_space<vmem>>, %arg2: memref<128x128xbf16, #tpu.memory_space<vmem>>, %arg3: memref<1x128xf32, #tpu.memory_space<vmem>>, %arg4: memref<128x128xf32, #tpu.memory_space<vmem>>) attributes {dimension_semantics = [#tpu.dimension_semantics<parallel>], iteration_bounds = array<i64: 2>, scalar_prefetch = 0 : i64, scratch_operands = 0 : i64, tpu.core_type = #tpu.core_type<tc>, window_params = [{transform_indices = @transform_0, window_bounds = array<i64: 128, 128>}, {pipeline_mode = #tpu.pipeline_mode<synchronous>, transform_indices = @transform_1, window_bounds = array<i64: 128, 128>}, {pipeline_mode = #tpu.pipeline_mode<synchronous>, transform_indices = @transform_2, window_bounds = array<i64: 1, 128>}, {transform_indices = @transform_3, window_bounds = array<i64: 128, 128>}]} {
    %c0 = arith.constant 0 : index
    %c0_0 = arith.constant 0 : index
    %0 = vector.load %arg1[%c0, %c0_0] : memref<128x128xbf16, #tpu.memory_space<vmem>>, vector<128x128xbf16>
    %c0_1 = arith.constant 0 : index
    %c0_2 = arith.constant 0 : index
    %1 = vector.load %arg2[%c0_1, %c0_2] : memref<128x128xbf16, #tpu.memory_space<vmem>>, vector<128x128xbf16>
    %cst = arith.constant dense<0.000000e+00> : vector<128x128xf32>
    %2 = tpu.matmul %0, %1, %cst {dimension_numbers = #tpu.dot_dimension_numbers<[1], [0], [0], [1], [0, 0, 1, 1], [], []>} : vector<128x128xbf16>, vector<128x128xbf16>, vector<128x128xf32> -> vector<128x128xf32>
    %c0_3 = arith.constant 0 : index
    %c0_4 = arith.constant 0 : index
    %3 = vector.load %arg3[%c0_3, %c0_4] : memref<1x128xf32, #tpu.memory_space<vmem>>, vector<1x128xf32>
    %4 = vector.broadcast %3 : vector<1x128xf32> to vector<128x128xf32>
    %5 = arith.addf %2, %4 : vector<128x128xf32>
    %cst_5 = arith.constant dense<0xFF800000> : vector<128xf32>
    %6 = vector.multi_reduction <maximumf>, %5, %cst_5 [1] : vector<128x128xf32> to vector<128xf32>
    %7 = vector.shape_cast %6 : vector<128xf32> to vector<128x1xf32>
    %8 = vector.broadcast %7 : vector<128x1xf32> to vector<128x128xf32>
    %9 = arith.subf %5, %8 : vector<128x128xf32>
    %10 = math.exp %9 : vector<128x128xf32>
    %cst_6 = arith.constant dense<0.000000e+00> : vector<128xf32>
    %11 = vector.multi_reduction <add>, %10, %cst_6 [1] : vector<128x128xf32> to vector<128xf32>
    %12 = vector.shape_cast %11 : vector<128xf32> to vector<128x1xf32>
    %13 = math.log %12 : vector<128x1xf32>
    %14 = vector.broadcast %13 : vector<128x1xf32> to vector<128x128xf32>
    %15 = arith.subf %9, %14 : vector<128x128xf32>
    %c0_7 = arith.constant 0 : index
    %c0_8 = arith.constant 0 : index
    %16 = vector.load %arg4[%c0_7, %c0_8] : memref<128x128xf32, #tpu.memory_space<vmem>>, vector<128x128xf32>
    tpu.vector_store %arg4[%c0_7, %c0_8], %15 {strides = array<i32>} : memref<128x128xf32, #tpu.memory_space<vmem>>, vector<128x128xf32>,
    return
  }
  func.func @transform_0(%arg0: i32) -> (i32, i32) {
    %c0_i32 = arith.constant 0 : i32
    %c0_i32_0 = arith.constant 0 : i32
    return %arg0, %c0_i32 : i32, i32
  }
  func.func @transform_1(%arg0: i32) -> (i32, i32) {
    %c0_i32 = arith.constant 0 : i32
    %c0_i32_0 = arith.constant 0 : i32
    %c0_i32_1 = arith.constant 0 : i32
    return %c0_i32, %c0_i32_0 : i32, i32
  }
  func.func @transform_2(%arg0: i32) -> (i32, i32) {
    %c0_i32 = arith.constant 0 : i32
    %c0_i32_0 = arith.constant 0 : i32
    %c0_i32_1 = arith.constant 0 : i32
    return %c0_i32, %c0_i32_0 : i32, i32
  }
  func.func @transform_3(%arg0: i32) -> (i32, i32) {
    %c0_i32 = arith.constant 0 : i32
    %c0_i32_0 = arith.constant 0 : i32
    return %arg0, %c0_i32 : i32, i32
  }
}

module attributes {stable_mosaic.version = 11 : i64} {
  func.func @cbow_kernel(%arg0: i32, %arg1: memref<128x128xbf16, #tpu.memory_space<vmem>>, %arg2: memref<128x128xbf16, #tpu.memory_space<vmem>>, %arg3: memref<1x128xf32, #tpu.memory_space<vmem>>, %arg4: memref<128x128xf32, #tpu.memory_space<vmem>>) attributes {dimension_semantics = [#tpu.dimension_semantics<parallel>], iteration_bounds = array<i64: 2>, scalar_prefetch = 0 : i64, scratch_operands = 0 : i64, tpu.core_type = #tpu.core_type<tc>, window_params = [{transform_indices = @transform_0, window_bounds = array<i64: 128, 128>}, {pipeline_mode = #tpu.pipeline_mode<synchronous>, transform_indices = @transform_1, window_bounds = array<i64: 128, 128>}, {pipeline_mode = #tpu.pipeline_mode<synchronous>, transform_indices = @transform_2, window_bounds = array<i64: 1, 128>}, {transform_indices = @transform_3, window_bounds = array<i64: 128, 128>}]} {
    %c0 = arith.constant 0 : index
    %c0_0 = arith.constant 0 : index
    %0 = vector.load %arg1[%c0, %c0_0] : memref<128x128xbf16, #tpu.memory_space<vmem>>, vector<128x128xbf16>
    %c0_1 = arith.constant 0 : index
    %c0_2 = arith.constant 0 : index
    %1 = vector.load %arg2[%c0_1, %c0_2] : memref<128x128xbf16, #tpu.memory_space<vmem>>, vector<128x128xbf16>
    %cst = arith.constant dense<0.000000e+00> : vector<128x128xf32>
    %2 = tpu.matmul %0, %1, %cst {dimension_numbers = #tpu.dot_dimension_numbers<[1], [0], [0], [1], [0, 0, 1, 1], [], []>} : vector<128x128xbf16>, vector<128x128xbf16>, vector<128x128xf32> -> vector<128x128xf32>
    %c0_3 = arith.constant 0 : index
    %c0_4 = arith.constant 0 : index
    %3 = vector.load %arg3[%c0_3, %c0_4] : memref<1x128xf32, #tpu.memory_space<vmem>>, vector<1x128xf32>
    %4 = vector.broadcast %3 : vector<1x128xf32> to vector<128x128xf32>
    %5 = arith.addf %2, %4 : vector<128x128xf32>
    %cst_5 = arith.constant dense<0xFF800000> : vector<128xf32>
    %6 = vector.multi_reduction <maximumf>, %5, %cst_5 [1] : vector<128x128xf32> to vector<128xf32>
    %7 = vector.shape_cast %6 : vector<128xf32> to vector<128x1xf32>
    %8 = vector.broadcast %7 : vector<128x1xf32> to vector<128x128xf32>
    %9 = arith.subf %5, %8 : vector<128x128xf32>
    %10 = math.exp %9 : vector<128x128xf32>
    %cst_6 = arith.constant dense<0.000000e+00> : vector<128xf32>
    %11 = vector.multi_reduction <add>, %10, %cst_6 [1] : vector<128x128xf32> to vector<128xf32>
    %12 = vector.shape_cast %11 : vector<128xf32> to vector<128x1xf32>
    %13 = math.log %12 : vector<128x1xf32>
    %14 = vector.broadcast %13 : vector<128x1xf32> to vector<128x128xf32>
    %15 = arith.subf %9, %14 : vector<128x128xf32>
    %c0_7 = arith.constant 0 : index
    %c0_8 = arith.constant 0 : index
    %16 = vector.load %arg4[%c0_7, %c0_8] : memref<128x128xf32, #tpu.memory_space<vmem>>, vector<128x128xf32>
    tpu.vector_store %arg4[%c0_7, %c0_8], %15 {strides = array<i32>} : memref<128x128xf32, #tpu.memory_space<vmem>>, vector<128x128xf32>,
    return
  }
  func.func @transform_0(%arg0: i32) -> (i32, i32) {
    %c0_i32 = arith.constant 0 : i32
    %c0_i32_0 = arith.constant 0 : i32
    return %arg0, %c0_i32 : i32, i32
  }
  func.func @transform_1(%arg0: i32) -> (i32, i32) {
    %c0_i32 = arith.constant 0 : i32
    %c0_i32_0 = arith.constant 0 : i32
    %c0_i32_1 = arith.constant 0 : i32
    return %c0_i32, %c0_i32_0 : i32, i32
  }
  func.func @transform_2(%arg0: i32) -> (i32, i32) {
    %c0_i32 = arith.constant 0 : i32
    %c0_i32_0 = arith.constant 0 : i32
    %c0_i32_1 = arith.constant 0 : i32
    return %c0_i32, %c0_i32_0 : i32, i32
  }
  func.func @transform_3(%arg0: i32) -> (i32, i32) {
    %c0_i32 = arith.constant 0 : i32
    %c0_i32_0 = arith.constant 0 : i32
    return %arg0, %c0_i32 : i32, i32
  }
}

</mosaic_0001>

<bundles_post_ra>
// kernel: tpu_custom_call.1
= control target key start
LH: loop header
LB: loop body
LE: loop exit
PB: predicated region body
PF: predicated region fallthrough
CT: control target
= control target key end

     0   :  { %8 = vsyncpa [#allocation3], 0  ;;  %s1395_s0 = inlined_call_operand.hbm [shape: bf16[256,128], index: 0, kind: input, shape index: {}]   ;;  %s1396_s1 = inlined_call_operand.hbm [shape: bf16[128,128], index: 1, kind: input, shape index: {}]   ;;  %s1397_s2 = inlined_call_operand.vmem [shape: f32[1,128], index: 2, kind: input, shape index: {}]   ;;  %s1398_s3 = inlined_call_operand.hbm [shape: f32[256,128], index: 3, kind: output, shape index: {}]  }
   0x1   :  { %10 = vsyncpa [#allocation3 + $0x1], 0 }
   0x2   :  { %11 = vsyncpa [#allocation6], 0 }
   0x3   :  { %12 = vsyncpa [#allocation4], 0 }
   0x4   :  { %14 = vsyncpa [#allocation4 + $0x1], 0  ;;  %s1103_s12 = smov 0   ;;  %s1105_s13 = smov 0  }
   0x5   :  { %s1107_s14 = smov 0   ;;  %s1109_s15 = smov 0  }
   0x6 LB: > { %s1124_s16 = sadd.s32 4294967295, %s1074_s15   ;;  %s712_s17 = sadd.s32 4294967294, %s1074_s15   ;;  %s1074_s15 = sphi %s1109_s15, %s1420_s15   ;;  %s1070_s14 = sphi %s1107_s14, %s1419_s14   ;;  %s1066_s13 = sphi %s1105_s13, %s1418_s13   ;;  %s1062_s12 = sphi %s1103_s12, %s1417_s12  }
   0x7   : > { %p40_p0 = scmp.ne.s32.totalorder %s1066_s13, %s1062_s12  ;;  %p1399_p1 = scmp.eq.s32.totalorder %s1124_s16, 0 }
   0x8   : > { %p112_p3 = scmp.eq.s32.totalorder %s712_s17, 1  ;;  %p713_p5 = scmp.ge.s32.totalorder %s1074_s15, 1 }
   0x9   : > { %p1133_p4 = por %p1399_p1, %p40_p0  ;;  %p119_p7 = scmp.lt.s32.totalorder %s1074_s15, 3 }
   0xa   : > { %p1138_p6 = por %p112_p3, %p40_p0  ;;  %s1076_s21 = smov [#allocation5]  }
   0xb   : > { %s1403_s18 = scalar_select %p1133_p4, 1, 0 }
   0xc   : > { %s1404_s19 = scalar_select %p1138_p6, 1, 0 }
   0xd   : > { %p1143_p8 = pnand %p713_p5, %p119_p7  ;;  %s131_s22 = sshll.u32 %s1076_s21, 4  ;;  %s132_s22 = int_to_ptr.vmem [resolvable:$true] %s131_s22 }
   0xe   : > { %s1157_s24 = sadd.s32 1, %s1074_s15   ;;  %s27_s25 = sadd.s32 1, %s1070_s14 }
   0xf   : > { %s1405_s20 = scalar_select %p1143_p8, 1, 0 }
  0x10   : > { %p819_p9 = pneg %p1143_p8  ;;  %s24_s26 = ssub.s32 %s1074_s15, %s1157_s24 }
  0x11   : > { %s963_s27 = scalar_lea.vmem %s132_s22, 1024  ;;  %p971_p5 = scmp.lt.s32.totalorder %s132_s22, %s132_s22 }
  0x12   : > { %p1152_p11 = pnand %p819_p9, %p1399_p1  ;;  %p964_p13 = scmp.ne.s32.totalorder %s132_s22, %s963_s27 }
  0x13   : > { %p972_p7 = scmp.lt.s32.totalorder %s963_s27, %s963_s27 }
  0x14   : > { %p954_p12 = pneg %p1152_p11 }
  0x15   : > { %p973_p10 = por %p972_p7, %p971_p5 }
  0x16   : > { %p966_p0 = pnand %p964_p13, %p954_p12 }
  0x18   : > { %p967_p3 = pneg %p966_p0 }
  0x1a   : > { %p974_p2 = pnand %p973_p10, %p967_p3 }
  0x1c   : > { %977 = shalt.err (!%p974_p2)
}
  0x1d   : > { %s1077_s28 = smov 64   ;;  %s1078_s29 = smov 4  }
  0x1e   : > { %822 = dma.hbm_to_vmem [thread:$0]  (!%p1152_p11), %s1396_s1, 1024, %s132_s22, [#allocation6], %s1077_s28, %s1077_s28, %s1078_s29  }
  0x1f   : > { %p25_p2 = scmp.eq.s32.totalorder %s24_s26, 0  ;;  %p34_p9 = scmp.ne.s32.totalorder %s1070_s14, %s1066_s13 }
  0x20   : > { %p35_p10 = scmp.eq.s32.totalorder %s1074_s15, 0  ;;  %p832_p12 = scmp.lt.s32.totalorder %s1074_s15, 2 }
  0x21   : > { %s1177_s5 = scalar_select %p25_p2, %s1070_s14, %s27_s25  }
  0x22   : > { %p36_p13 = por %p35_p10, %p34_p9  ;;  %p1407_p0 = scmp.eq.s32.totalorder %s1124_s16, 1 }
  0x23   : > { %s148_s7 = sand.u32 1, %s1070_s14   ;;  %s745_s8 = sshll.u32 %s1074_s15, 10 }
  0x24   : > { %p1181_p3 = por %p1407_p0, %p34_p9  ;;  %s716_s9 = sshll.u32 %s148_s7, 6 }
  0x25   : > { %s1190_s17 = scalar_lea.hbm %s1395_s0, %s745_s8  ;;  %s152_s21 = scalar_lea.vmem [#allocation2], %s716_s9 }
  0x26   : > { %s1408_s6 = scalar_select %p1181_p3, 1, 0 }
  0x27   : > { %s159_s22 = sshll.u32 %s152_s21, 4  ;;  %p1192_p11 = pnand %p832_p12, %p36_p13  ;;  %s1196_s22 = int_to_ptr.vmem [resolvable:$true] %s159_s22 }
  0x28   : > { %s1198_s25 = scalar_lea.sflag [#allocation3], %s148_s7  ;;  %s978_s26 = scalar_lea.hbm %s1190_s17, 1024 }
  0x29   : > { %p979_p5 = scmp.ne.s32.totalorder %s1190_s17, %s978_s26  ;;  %p980_p7 = pneg %p1192_p11 }
  0x2a   : > { %s983_s4 = scalar_lea.hbm %s1395_s0, 2048  ;;  %p984_p10 = scmp.lt.s32.totalorder %s1190_s17, %s1395_s0 }
  0x2b   : > { %p981_p2 = pnand %p980_p7, %p979_p5  ;;  %p985_p12 = scmp.lt.s32.totalorder %s983_s4, %s978_s26 }
  0x2d   : > { %p982_p9 = pneg %p981_p2  ;;  %p986_p13 = por %p985_p12, %p984_p10 }
  0x2f   : > { %p987_p0 = pnand %p986_p13, %p982_p9 }
  0x31   : > { %990 = shalt.err (!%p987_p0)
}
  0x32   : > { %s991_s7 = scalar_lea.vmem %s1196_s22, 1024  ;;  %s1079_s10 = smov [#allocation2]  }
  0x33   : > { %p992_p1 = scmp.ne.s32.totalorder %s1196_s22, %s991_s7  ;;  %s996_s11 = sshll.u32 %s1079_s10, 4  ;;  %s997_s11 = int_to_ptr.vmem [resolvable:$false] %s996_s11 }
  0x34   : > { %s998_s21 = scalar_lea.vmem %s997_s11, 2048  ;;  %p999_p2 = scmp.lt.s32.totalorder %s1196_s22, %s997_s11 }
  0x35   : > { %p994_p6 = pnand %p992_p1, %p980_p7  ;;  %p1000_p3 = scmp.lt.s32.totalorder %s998_s21, %s991_s7 }
  0x37   : > { %p995_p5 = pneg %p994_p6  ;;  %p1001_p4 = por %p1000_p3, %p999_p2 }
  0x39   : > { %p1002_p8 = pnand %p1001_p4, %p995_p5 }
  0x3b   : > { %1005 = shalt.err (!%p1002_p8)
}
  0x3c   : > { %826 = dma.hbm_to_vmem [thread:$0]  (!%p1192_p11), %s1190_s17, 1024, %s1196_s22, %s1198_s25, %s1077_s28, %s1077_s28, %s1078_s29  }
  0x3d   : > { %p1410_p1 = scmp.ne.s32.totalorder %s1405_s20, 0 }
  0x3e   : > { %s1225_s26 = sand.u32 (!%p1410_p1), 1, %s1066_s13   ;;  %p1411_p4 = scmp.ne.s32.totalorder (!%p1410_p1), %s1403_s18, 0 }
  0x3f   : > { %171 = sbr.rel (%p1410_p1) target bundleno = 658 (0x292), region = 32  ;;  %s720_s27 = sshll.u32 (!%p1410_p1), %s1225_s26, 6 }
  0x40   : > { %s174_s30 = scalar_lea.sflag (!%p1410_p1), [#allocation3], %s1225_s26  ;;  %s1229_s4 = scalar_lea.vmem (!%p1410_p1), [#allocation2], %s720_s27 }
  0x44   : > { %1049 = dma.done.wait (%p1411_p4), %s174_s30, 1024  }
  0x45   : > { %1051 = vsyncadd (%p1411_p4), %s174_s30, 4294966272  ;;  %p1412_p6 = scmp.eq.s32.totalorder %s1124_s16, 0 }
  0x47   : > { %1053 = dma.done.wait (%p1412_p6), [#allocation6], 1024   ;;  %p1413_p8 = pmov %p1412_p6 }
  0x48   : > { %v872_v0 = vld [vmem:[#allocation5 + $0x38] sm:$0xff]   ;;  %v873_v1 = vld [vmem:[#allocation5 + $0x30] sm:$0xff]   ;;  %v874_v2 = vld [vmem:[#allocation5 + $0x28] sm:$0xff]   ;;  %s722_s28 = sshll.u32 %s1225_s26, 7  ;;  %s746_s17 = sshll.u32 %s1124_s16, 11 }
  0x49   : > { %1055 = vsyncadd (%p1413_p8), [#allocation6], 4294966272  ;;  %763 = vmatprep.subr.bf16.mxu0 %v872_v0  ;;  %795 = vmatprep.subr.bf16.mxu1 %v872_v0  ;;  %v875_v3 = vld [vmem:[#allocation5 + $0x20] sm:$0xff]   ;;  %v876_v6 = vld [vmem:[#allocation5 + $0x18] sm:$0xff]   ;;  %s1312_s29 = scalar_lea.vmem [#allocation7], %s722_s28  ;;  %s1348_s8 = scalar_lea.hbm %s1398_s3, %s746_s17 }
  0x4a   : > { %764 = vmatpush3.bf16.msra.mxu0 %v872_v0  ;;  %803 = vmatpush3.bf16.msra.mxu1 %v872_v0  ;;  %v880_v4 = vld [vmem:[%s1229_s4] sm:$0xff]   ;;  %v877_v7 = vld [vmem:[#allocation5 + $0x10] sm:$0xff]   ;;  %v878_v8 = vld [vmem:[#allocation5 + $0x8] sm:$0xff]   ;;  %s629_s22 = sshll.u32 %s1312_s29, 4  ;;  %s616_s16 = scalar_lea.sflag [#allocation4], %s1225_s26  ;;  %s1350_s22 = int_to_ptr.vmem [resolvable:$true] %s629_s22 }
  0x4b   : > { %765 = vmatprep.subr.bf16.mxu0 %v873_v1  ;;  %796 = vmatprep.subr.bf16.mxu1 %v873_v1  ;;  %v881_v5 = vld [vmem:[%s1229_s4 + $0x20] sm:$0xff]   ;;  %v882_v10 = vld [vmem:[%s1229_s4 + $0x8] sm:$0xff]   ;;  %v884_v12 = vld [vmem:[%s1229_s4 + $0x10] sm:$0xff]   ;;  %s1006_s9 = scalar_lea.vmem %s1350_s22, 2048  ;;  %p1414_p11 = scmp.ne.s32.totalorder %s1408_s6, 0 }
  0x4c   : > { %779 = vmatprep.mubr.bf16.mxu0 %v880_v4  ;;  %787 = vmatprep.mubr.bf16.mxu1 %v881_v5  ;;  %v879_v9 = vld [vmem:[#allocation5] sm:$0xff]   ;;  %v883_v11 = vld [vmem:[%s1229_s4 + $0x28] sm:$0xff]   ;;  %v886_v13 = vld [vmem:[%s1229_s4 + $0x30] sm:$0xff]   ;;  %p1007_p3 = scmp.ne.s32.totalorder %s1350_s22, %s1006_s9  ;;  %s1080_s7 = smov [#allocation7]  }
  0x4d   : > { %v885_v14 = vld [vmem:[%s1229_s4 + $0x18] sm:$0xff]   ;;  %v723_v16 = vld [vmem:[%s1397_s2] ss:$0 sm:$0xff]  ;;  %s1010_s10 = sshll.u32 %s1080_s7, 4  ;;  %s1011_s10 = int_to_ptr.vmem [resolvable:$false] %s1010_s10 }
  0x4e   : > { %766 = vmatpush3.bf16.msra.mxu0 %v873_v1  ;;  %804 = vmatpush3.bf16.msra.mxu1 %v873_v1  ;;  %v887_v15 = vld [vmem:[%s1229_s4 + $0x38] sm:$0xff]   ;;  %p1008_p7 = pnand %p1007_p3, %p1414_p11  ;;  %s1012_s11 = scalar_lea.vmem %s1011_s10, 4096 }
  0x4f   : > { %767 = vmatprep.subr.bf16.mxu0 %v874_v2  ;;  %797 = vmatprep.subr.bf16.mxu1 %v874_v2  ;;  %p1013_p10 = scmp.lt.s32.totalorder %s1350_s22, %s1011_s10  ;;  %p1014_p12 = scmp.lt.s32.totalorder %s1012_s11, %s1006_s9 }
  0x50   : > { %p1009_p9 = pneg %p1008_p7 }
  0x51   : > { %p1015_p13 = por %p1014_p12, %p1013_p10 }
  0x52   : > { %768 = vmatpush3.bf16.msra.mxu0 %v874_v2  ;;  %805 = vmatpush3.bf16.msra.mxu1 %v874_v2 }
  0x53   : > { %769 = vmatprep.subr.bf16.mxu0 %v875_v3  ;;  %798 = vmatprep.subr.bf16.mxu1 %v875_v3  ;;  %p1016_p0 = pnand %p1015_p13, %p1009_p9 }
  0x56   : > { %770 = vmatpush3.bf16.msra.mxu0 %v875_v3  ;;  %806 = vmatpush3.bf16.msra.mxu1 %v875_v3 }
  0x57   : > { %771 = vmatprep.subr.bf16.mxu0 %v876_v6  ;;  %799 = vmatprep.subr.bf16.mxu1 %v876_v6 }
  0x5a   : > { %772 = vmatpush3.bf16.msra.mxu0 %v876_v6  ;;  %807 = vmatpush3.bf16.msra.mxu1 %v876_v6 }
  0x5b   : > { %773 = vmatprep.subr.bf16.mxu0 %v877_v7  ;;  %800 = vmatprep.subr.bf16.mxu1 %v877_v7 }
  0x5e   : > { %774 = vmatpush3.bf16.msra.mxu0 %v877_v7  ;;  %808 = vmatpush3.bf16.msra.mxu1 %v877_v7 }
  0x5f   : > { %775 = vmatprep.subr.bf16.mxu0 %v878_v8  ;;  %801 = vmatprep.subr.bf16.mxu1 %v878_v8 }
  0x62   : > { %776 = vmatpush3.bf16.msra.mxu0 %v878_v8  ;;  %809 = vmatpush3.bf16.msra.mxu1 %v878_v8 }
  0x63   : > { %777 = vmatprep.subr.bf16.mxu0 %v879_v9  ;;  %802 = vmatprep.subr.bf16.mxu1 %v879_v9 }
  0x66   : > { %778 = vmatpush3.bf16.msra.mxu0 %v879_v9  ;;  %810 = vmatpush3.bf16.msra.mxu1 %v879_v9 }
  0x69   : > { %780 = vmatmul.mubr.bf16.vlgmr.msra.gmra.mxu0 %v882_v10  ;;  %788 = vmatmul.mubr.bf16.vlgmr.msra.gmra.mxu1 %v883_v11 }
  0x6a   : > { %783 = vmatprep.mubr.bf16.mxu0 %v884_v12  ;;  %791 = vmatprep.mubr.bf16.mxu1 %v886_v13 }
  0x71   : > { %784 = vmatmul.mubr.bf16.gmra.mxu0 %v885_v14  ;;  %792 = vmatmul.mubr.bf16.gmra.mxu1 %v887_v15 }
 0x129   : > { %v781_v17 = vpop.f32.mrf.mxu0  ;;  %v789_v18 = vpop.f32.mrf.mxu1 }
 0x12a   : > { %v385_v19 = vadd.f32 %v781_v17, %v723_v16  ;;  %v417_v20 = vadd.f32 %v789_v18, %v723_v16 }
 0x12b   : > { %v376_v21 = vpop.f32.mrf.mxu0  ;;  %v408_v22 = vpop.f32.mrf.mxu1 }
 0x12c   : > { %459 = vmax.xlane.f32.xlu0 %v417_v20  ;;  %443 = vmax.xlane.f32.xlu1 %v385_v19  ;;  %v377_v25 = vadd.f32 %v723_v16, %v376_v21  ;;  %v409_v30 = vadd.f32 %v723_v16, %v408_v22 }
 0x12d   : > { %v782_v23 = vpop.f32.mrf.mxu0  ;;  %v790_v24 = vpop.f32.mrf.mxu1 }
 0x12e   : > { %v388_v26 = vadd.f32 %v782_v23, %v723_v16  ;;  %v420_v31 = vadd.f32 %v790_v24, %v723_v16 }
 0x12f   : > { %v379_v27 = vpop.f32.mrf.mxu0  ;;  %v411_v28 = vpop.f32.mrf.mxu1 }
 0x130   : > { %445 = vmax.xlane.f32.xlu1 %v388_v26  ;;  %439 = vmax.xlane.f32.xlu0 %v377_v25  ;;  %v380_v34 = vadd.f32 %v723_v16, %v379_v27  ;;  %v412_v35 = vadd.f32 %v723_v16, %v411_v28 }
 0x131   : > { %v785_v29 = vpop.f32.mrf.mxu0  ;;  %v793_v33 = vpop.f32.mrf.mxu1 }
 0x132   : > { %v401_v38 = vadd.f32 %v785_v29, %v723_v16  ;;  %v1253_v47 = vadd.f32 %v793_v33, %v723_v16 }
 0x133   : > { %v392_v32 = vpop.f32.mrf.mxu0  ;;  %v424_v37 = vpop.f32.mrf.mxu1 }
 0x134   : > { %461 = vmax.xlane.f32.xlu1 %v420_v31  ;;  %455 = vmax.xlane.f32.xlu0 %v409_v30  ;;  %v393_v42 = vadd.f32 %v723_v16, %v392_v32  ;;  %v1250_v45 = vadd.f32 %v723_v16, %v424_v37 }
 0x135   : > { %v786_v36 = vpop.f32.mrf.mxu0  ;;  %v794_v41 = vpop.f32.mrf.mxu1 }
 0x136   : > { %v404_v39 = vadd.f32 %v786_v36, %v723_v16  ;;  %v1255_v48 = vadd.f32 %v794_v41, %v723_v16 }
 0x137   : > { %v395_v40 = vpop.f32.mrf.mxu0  ;;  %v427_v44 = vpop.f32.mrf.mxu1 }
 0x138   : > { %457 = vmax.xlane.f32.xlu1 %v412_v35  ;;  %441 = vmax.xlane.f32.xlu0 %v380_v34  ;;  %v396_v43 = vadd.f32 %v723_v16, %v395_v40  ;;  %v428_v46 = vadd.f32 %v723_v16, %v427_v44 }
 0x13c   : > { %453 = vmax.xlane.f32.xlu1 %v404_v39  ;;  %451 = vmax.xlane.f32.xlu0 %v401_v38 }
 0x140   : > { %449 = vmax.xlane.f32.xlu1 %v396_v43  ;;  %447 = vmax.xlane.f32.xlu0 %v393_v42 }
 0x144   : > { %465 = vmax.xlane.f32.xlu1 %v428_v46  ;;  %463 = vmax.xlane.f32.xlu0 %v1250_v45 }
 0x148   : > { %469 = vmax.xlane.f32.xlu1 %v1255_v48  ;;  %467 = vmax.xlane.f32.xlu0 %v1253_v47 }
 0x1b5   : > { %v460_v49 = vpop.xlane.xlu0 %459  ;;  %v444_v50 = vpop.xlane.xlu1 %443 }
 0x1b6   : > { %v1259_v51 = vsub.f32 %v385_v19, %v444_v50  ;;  %v1261_v52 = vsub.f32 %v417_v20, %v460_v49 }
 0x1b8   : > { %v491_v53 = vmul.f32 1.442695, %v1259_v51  ;;  %v507_v57 = vmul.f32 1.442695, %v1261_v52 }
 0x1b9   : > { %v446_v54 = vpop.xlane.xlu1 %445  ;;  %v440_v55 = vpop.xlane.xlu0 %439 }
 0x1ba   : > { %v1264_v56 = vsub.f32 %v388_v26, %v446_v54  ;;  %888 = vpow2.f32 %v491_v53  ;;  %v1267_v58 = vsub.f32 %v377_v25, %v440_v55 }
 0x1bc   : > { %v493_v59 = vmul.f32 1.442695, %v1264_v56  ;;  %v487_v0 = vmul.f32 1.442695, %v1267_v58 }
 0x1bd   : > { %v462_v60 = vpop.xlane.xlu1 %461  ;;  %v456_v61 = vpop.xlane.xlu0 %455 }
 0x1be   : > { %890 = vpow2.f32 %v493_v59  ;;  %v1270_v62 = vsub.f32 %v420_v31, %v462_v60  ;;  %v1272_v63 = vsub.f32 %v409_v30, %v456_v61 }
 0x1bf   : > { %892 = vpow2.f32 %v507_v57 }
 0x1c0   : > { %v509_v1 = vmul.f32 1.442695, %v1270_v62  ;;  %v503_v4 = vmul.f32 1.442695, %v1272_v63 }
 0x1c1   : > { %v458_v2 = vpop.xlane.xlu1 %457  ;;  %v442_v3 = vpop.xlane.xlu0 %441 }
 0x1c2   : > { %894 = vpow2.f32 %v509_v1  ;;  %v1277_v5 = vsub.f32 %v412_v35, %v458_v2  ;;  %v1279_v6 = vsub.f32 %v380_v34, %v442_v3 }
 0x1c3   : > { %896 = vpow2.f32 %v487_v0 }
 0x1c4   : > { %v489_v7 = vmul.f32 1.442695, %v1279_v6  ;;  %898 = vpow2.f32 %v503_v4  ;;  %v505_v10 = vmul.f32 1.442695, %v1277_v5 }
 0x1c5   : > { %v454_v8 = vpop.xlane.xlu1 %453  ;;  %v452_v9 = vpop.xlane.xlu0 %451 }
 0x1c6   : > { %v1283_v11 = vsub.f32 %v404_v39, %v454_v8  ;;  %v1285_v12 = vsub.f32 %v401_v38, %v452_v9  ;;  %900 = vpow2.f32 %v489_v7 }
 0x1c7   : > { %v889_v13 = vpop.eup %888  ;;  %902 = vpow2.f32 %v505_v10 }
 0x1c8   : > { %v499_v14 = vmul.f32 1.442695, %v1285_v12  ;;  %523 = vadd.xlane.f32.xlu0 %v889_v13  ;;  %v501_v17 = vmul.f32 1.442695, %v1283_v11 }
 0x1c9   : > { %v450_v15 = vpop.xlane.xlu1 %449  ;;  %v448_v16 = vpop.xlane.xlu0 %447 }
 0x1ca   : > { %v1289_v18 = vsub.f32 %v396_v43, %v450_v15  ;;  %v1291_v19 = vsub.f32 %v393_v42, %v448_v16  ;;  %904 = vpow2.f32 %v499_v14 }
 0x1cb   : > { %v891_v20 = vpop.eup %890  ;;  %906 = vpow2.f32 %v501_v17 }
 0x1cc   : > { %v893_v21 = vpop.eup %892  ;;  %v495_v22 = vmul.f32 1.442695, %v1291_v19  ;;  %525 = vadd.xlane.f32.xlu1 %v891_v20  ;;  %v497_v25 = vmul.f32 1.442695, %v1289_v18 }
 0x1cd   : > { %539 = vadd.xlane.f32.xlu0 %v893_v21  ;;  %v466_v23 = vpop.xlane.xlu1 %465  ;;  %v464_v24 = vpop.xlane.xlu0 %463 }
 0x1ce   : > { %v1295_v26 = vsub.f32 %v428_v46, %v466_v23  ;;  %v1298_v27 = vsub.f32 %v1250_v45, %v464_v24  ;;  %908 = vpow2.f32 %v495_v22 }
 0x1cf   : > { %v895_v28 = vpop.eup %894  ;;  %910 = vpow2.f32 %v497_v25 }
 0x1d0   : > { %v897_v29 = vpop.eup %896  ;;  %v511_v30 = vmul.f32 1.442695, %v1298_v27  ;;  %541 = vadd.xlane.f32.xlu1 %v895_v28  ;;  %v513_v33 = vmul.f32 1.442695, %v1295_v26 }
 0x1d1   : > { %519 = vadd.xlane.f32.xlu0 %v897_v29  ;;  %v470_v31 = vpop.xlane.xlu1 %469  ;;  %v468_v32 = vpop.xlane.xlu0 %467 }
 0x1d2   : > { %v1303_v34 = vsub.f32 %v1253_v47, %v468_v32  ;;  %v899_v35 = vpop.eup %898  ;;  %912 = vpow2.f32 %v511_v30  ;;  %v1306_v36 = vsub.f32 %v1255_v48, %v470_v31 }
 0x1d3   : > { %v901_v37 = vpop.eup %900  ;;  %914 = vpow2.f32 %v513_v33 }
 0x1d4   : > { %v515_v38 = vmul.f32 1.442695, %v1303_v34  ;;  %521 = vadd.xlane.f32.xlu1 %v901_v37  ;;  %v903_v39 = vpop.eup %902  ;;  %v517_v40 = vmul.f32 1.442695, %v1306_v36 }
 0x1d5   : > { %535 = vadd.xlane.f32.xlu0 %v899_v35 }
 0x1d6   : > { %916 = vpow2.f32 %v515_v38 }
 0x1d7   : > { %v905_v41 = vpop.eup %904  ;;  %918 = vpow2.f32 %v517_v40 }
 0x1d8   : > { %537 = vadd.xlane.f32.xlu1 %v903_v39  ;;  %v907_v42 = vpop.eup %906 }
 0x1d9   : > { %531 = vadd.xlane.f32.xlu0 %v905_v41 }
 0x1db   : > { %v909_v43 = vpop.eup %908 }
 0x1dc   : > { %533 = vadd.xlane.f32.xlu1 %v907_v42  ;;  %v911_v44 = vpop.eup %910 }
 0x1dd   : > { %527 = vadd.xlane.f32.xlu0 %v909_v43 }
 0x1df   : > { %v913_v45 = vpop.eup %912 }
 0x1e0   : > { %529 = vadd.xlane.f32.xlu1 %v911_v44  ;;  %v915_v46 = vpop.eup %914 }
 0x1e1   : > { %543 = vadd.xlane.f32.xlu0 %v913_v45 }
 0x1e3   : > { %v917_v47 = vpop.eup %916 }
 0x1e4   : > { %545 = vadd.xlane.f32.xlu1 %v915_v46  ;;  %v919_v48 = vpop.eup %918 }
 0x1e5   : > { %547 = vadd.xlane.f32.xlu0 %v917_v47 }
 0x1e8   : > { %549 = vadd.xlane.f32.xlu1 %v919_v48 }
 0x251   : > { %v524_v49 = vpop.xlane.xlu0 %523 }
 0x252   : > { %920 = vlog2.f32 %v524_v49 }
 0x255   : > { %v526_v50 = vpop.xlane.xlu1 %525 }
 0x256   : > { %922 = vlog2.f32 %v526_v50  ;;  %v540_v53 = vpop.xlane.xlu0 %539 }
 0x257   : > { %924 = vlog2.f32 %v540_v53 }
 0x259   : > { %v542_v54 = vpop.xlane.xlu1 %541 }
 0x25a   : > { %926 = vlog2.f32 %v542_v54  ;;  %v520_v55 = vpop.xlane.xlu0 %519 }
 0x25b   : > { %928 = vlog2.f32 %v520_v55 }
 0x25d   : > { %v522_v57 = vpop.xlane.xlu1 %521 }
 0x25e   : > { %v536_v59 = vpop.xlane.xlu0 %535  ;;  %930 = vlog2.f32 %v522_v57 }
 0x25f   : > { %v921_v60 = vpop.eup %920  ;;  %932 = vlog2.f32 %v536_v59 }
 0x260   : > { %v556_v61 = vmul.f32 0.6931472, %v921_v60 }
 0x261   : > { %v538_v0 = vpop.xlane.xlu1 %537 }
 0x262   : > { %v532_v1 = vpop.xlane.xlu0 %531  ;;  %v585_v3 = vsub.f32 %v1259_v51, %v556_v61  ;;  %934 = vlog2.f32 %v538_v0 }
 0x263   : > { %v923_v2 = vpop.eup %922  ;;  %936 = vlog2.f32 %v532_v1 }
 0x264   : > { %v925_v4 = vpop.eup %924  ;;  %v558_v7 = vmul.f32 0.6931472, %v923_v2  ;;  %601 = vst [vmem:[%s1312_s29 + $0x10] sm:$0xff] %v585_v3 }
 0x265   : > { %v572_v8 = vmul.f32 0.6931472, %v925_v4  ;;  %v534_v10 = vpop.xlane.xlu1 %533 }
 0x266   : > { %v586_v9 = vsub.f32 %v1264_v56, %v558_v7  ;;  %v528_v13 = vpop.xlane.xlu0 %527  ;;  %938 = vlog2.f32 %v534_v10 }
 0x267   : > { %v927_v14 = vpop.eup %926  ;;  %v593_v15 = vsub.f32 %v1261_v52, %v572_v8  ;;  %940 = vlog2.f32 %v528_v13 }
 0x268   : > { %v929_v51 = vpop.eup %928  ;;  %602 = vst [vmem:[%s1312_s29 + $0x18] sm:$0xff] %v586_v9  ;;  %v574_v16 = vmul.f32 0.6931472, %v927_v14 }
 0x269   : > { %609 = vst [vmem:[%s1312_s29 + $0x50] sm:$0xff] %v593_v15  ;;  %v552_v17 = vmul.f32 0.6931472, %v929_v51  ;;  %v530_v21 = vpop.xlane.xlu1 %529 }
 0x26a   : > { %v594_v20 = vsub.f32 %v1270_v62, %v574_v16  ;;  %v544_v22 = vpop.xlane.xlu0 %543  ;;  %942 = vlog2.f32 %v530_v21 }
 0x26b   : > { %v583_v56 = vsub.f32 %v1267_v58, %v552_v17  ;;  %v931_v23 = vpop.eup %930  ;;  %944 = vlog2.f32 %v544_v22 }
 0x26c   : > { %610 = vst [vmem:[%s1312_s29 + $0x58] sm:$0xff] %v594_v20  ;;  %v933_v52 = vpop.eup %932  ;;  %v554_v24 = vmul.f32 0.6931472, %v931_v23 }
 0x26d   : > { %599 = vst [vmem:[%s1312_s29] sm:$0xff] %v583_v56  ;;  %v568_v25 = vmul.f32 0.6931472, %v933_v52  ;;  %v546_v28 = vpop.xlane.xlu1 %545 }
 0x26e   : > { %v548_v29 = vpop.xlane.xlu0 %547  ;;  %v584_v30 = vsub.f32 %v1279_v6, %v554_v24  ;;  %946 = vlog2.f32 %v546_v28 }
 0x26f   : > { %v935_v62 = vpop.eup %934  ;;  %v591_v58 = vsub.f32 %v1272_v63, %v568_v25  ;;  %948 = vlog2.f32 %v548_v29 }
 0x270   : > { %v937_v31 = vpop.eup %936  ;;  %600 = vst [vmem:[%s1312_s29 + $0x8] sm:$0xff] %v584_v30  ;;  %v570_v32 = vmul.f32 0.6931472, %v935_v62 }
 0x271   : > { %607 = vst [vmem:[%s1312_s29 + $0x40] sm:$0xff] %v591_v58  ;;  %v564_v33 = vmul.f32 0.6931472, %v937_v31  ;;  %v550_v35 = vpop.xlane.xlu1 %549 }
 0x272   : > { %v592_v37 = vsub.f32 %v1277_v5, %v570_v32  ;;  %950 = vlog2.f32 %v550_v35 }
 0x273   : > { %v939_v38 = vpop.eup %938  ;;  %v589_v6 = vsub.f32 %v1285_v12, %v564_v33 }
 0x274   : > { %v941_v39 = vpop.eup %940  ;;  %608 = vst [vmem:[%s1312_s29 + $0x48] sm:$0xff] %v592_v37  ;;  %v566_v40 = vmul.f32 0.6931472, %v939_v38 }
 0x275   : > { %605 = vst [vmem:[%s1312_s29 + $0x30] sm:$0xff] %v589_v6  ;;  %v560_v63 = vmul.f32 0.6931472, %v941_v39 }
 0x276   : > { %v590_v41 = vsub.f32 %v1283_v11, %v566_v40 }
 0x277   : > { %v943_v42 = vpop.eup %942  ;;  %v587_v43 = vsub.f32 %v1291_v19, %v560_v63 }
 0x278   : > { %v945_v44 = vpop.eup %944  ;;  %606 = vst [vmem:[%s1312_s29 + $0x38] sm:$0xff] %v590_v41  ;;  %v562_v5 = vmul.f32 0.6931472, %v943_v42 }
 0x279   : > { %603 = vst [vmem:[%s1312_s29 + $0x20] sm:$0xff] %v587_v43  ;;  %v576_v12 = vmul.f32 0.6931472, %v945_v44 }
 0x27a   : > { %v588_v45 = vsub.f32 %v1289_v18, %v562_v5 }
 0x27b   : > { %v947_v46 = vpop.eup %946  ;;  %v595_v47 = vsub.f32 %v1298_v27, %v576_v12 }
 0x27c   : > { %v949_v48 = vpop.eup %948  ;;  %604 = vst [vmem:[%s1312_s29 + $0x28] sm:$0xff] %v588_v45  ;;  %v578_v11 = vmul.f32 0.6931472, %v947_v46 }
 0x27d   : > { %611 = vst [vmem:[%s1312_s29 + $0x60] sm:$0xff] %v595_v47  ;;  %v580_v19 = vmul.f32 0.6931472, %v949_v48 }
 0x27e   : > { %v596_v49 = vsub.f32 %v1295_v26, %v578_v11 }
 0x27f   : > { %v951_v50 = vpop.eup %950  ;;  %v597_v53 = vsub.f32 %v1303_v34, %v580_v19 }
 0x280   : > { %612 = vst [vmem:[%s1312_s29 + $0x68] sm:$0xff] %v596_v49  ;;  %v582_v18 = vmul.f32 0.6931472, %v951_v50 }
 0x281   : > { %613 = vst [vmem:[%s1312_s29 + $0x70] sm:$0xff] %v597_v53 }
 0x282   : > { %v598_v26 = vsub.f32 %v1306_v36, %v582_v18 }
 0x284   : > { %614 = vst [vmem:[%s1312_s29 + $0x78] sm:$0xff] %v598_v26 }
 0x285   : > { %1019 = shalt.err (!%p1016_p0)
}
 0x286   : > { %s1020_s21 = scalar_lea.hbm %s1348_s8, 2048  ;;  %s1024_s4 = scalar_lea.hbm %s1398_s3, 4096 }
 0x287   : > { %p1021_p5 = scmp.ne.s32.totalorder %s1348_s8, %s1020_s21  ;;  %p1025_p4 = scmp.lt.s32.totalorder %s1348_s8, %s1398_s3 }
 0x288   : > { %p1026_p6 = scmp.lt.s32.totalorder %s1024_s4, %s1020_s21 }
 0x289   : > { %p1022_p2 = pnand %p1021_p5, %p1414_p11 }
 0x28a   : > { %p1027_p8 = por %p1026_p6, %p1025_p4 }
 0x28b   : > { %p1023_p1 = pneg %p1022_p2 }
 0x28d   : > { %p1028_p3 = pnand %p1027_p8, %p1023_p1 }
 0x28f   : > { %1031 = shalt.err (!%p1028_p3)
}
 0x290   : > { %s1081_s28 = smov 128   ;;  %s1082_s29 = smov 8  }
 0x291   : > { %817 = dma.vmem_to_hbm [thread:$0]  (%p1414_p11), %s1350_s22, 2048, %s1348_s8, %s616_s16, %s1081_s28, %s1081_s28, %s1082_s29  }
 0x292 PF: > { %s644_s17 = sand.u32 1, %s1062_s12   ;;  %p1415_p7 = scmp.ne.s32.totalorder %s1404_s19, 0 }
 0x293   : > { %p1416_p9 = scmp.ge.s32.totalorder %s1074_s15, 2  ;;  %s645_s23 = scalar_lea.sflag [#allocation4], %s644_s17 }
 0x295   : > { %p828_p10 = pnand %p1416_p9, %p1415_p7 }
 0x297   : > { %p829_p12 = pneg %p828_p10 }
 0x299   : > { %1057 = dma.done.wait (%p829_p12), %s645_s23, 2048  }
 0x29a   : > { %1059 = vsyncadd (%p829_p12), %s645_s23, 4294965248  ;;  %p17_p13 = scmp.ge.s32.totalorder %s1157_s24, 4   ;;  %s1417_s12 = smov %s1066_s13 }
 0x29b   : > { %s1418_s13 = smov %s1070_s14  ;;  %s1419_s14 = smov %s1177_s5 }
 0x29c   : > { %s1420_s15 = smov %s1157_s24  ;;  %19 = sbr.rel (!%p17_p13) target bundleno = 6 (0x6), region = 81 }
 0x2a1   :  { %650 = vsyncpa [#allocation3], 1 }
 0x2a2   :  { %652 = vsyncpa [#allocation3 + $0x1], 1 }
 0x2a3   :  { %653 = vsyncpa [#allocation6], 1 }
 0x2a4   :  { %654 = vsyncpa [#allocation4], 1 }
 0x2a5   :  { %656 = vsyncpa [#allocation4 + $0x1], 1 }

// kernel: tpu_custom_call.1
= control target key start
LH: loop header
LB: loop body
LE: loop exit
PB: predicated region body
PF: predicated region fallthrough
CT: control target
= control target key end

     0   :  { %8 = vsyncpa [#allocation3], 0  ;;  %s1395_s0 = inlined_call_operand.hbm [shape: bf16[256,128], index: 0, kind: input, shape index: {}]   ;;  %s1396_s1 = inlined_call_operand.hbm [shape: bf16[128,128], index: 1, kind: input, shape index: {}]   ;;  %s1397_s2 = inlined_call_operand.vmem [shape: f32[1,128], index: 2, kind: input, shape index: {}]   ;;  %s1398_s3 = inlined_call_operand.hbm [shape: f32[256,128], index: 3, kind: output, shape index: {}]  }
   0x1   :  { %10 = vsyncpa [#allocation3 + $0x1], 0 }
   0x2   :  { %11 = vsyncpa [#allocation6], 0 }
   0x3   :  { %12 = vsyncpa [#allocation4], 0 }
   0x4   :  { %14 = vsyncpa [#allocation4 + $0x1], 0  ;;  %s1103_s12 = smov 0   ;;  %s1105_s13 = smov 0  }
   0x5   :  { %s1107_s14 = smov 0   ;;  %s1109_s15 = smov 0  }
   0x6 LB: > { %s1124_s16 = sadd.s32 4294967295, %s1074_s15   ;;  %s712_s17 = sadd.s32 4294967294, %s1074_s15   ;;  %s1074_s15 = sphi %s1109_s15, %s1420_s15   ;;  %s1070_s14 = sphi %s1107_s14, %s1419_s14   ;;  %s1066_s13 = sphi %s1105_s13, %s1418_s13   ;;  %s1062_s12 = sphi %s1103_s12, %s1417_s12  }
   0x7   : > { %p40_p0 = scmp.ne.s32.totalorder %s1066_s13, %s1062_s12  ;;  %p1399_p1 = scmp.eq.s32.totalorder %s1124_s16, 0 }
   0x8   : > { %p112_p3 = scmp.eq.s32.totalorder %s712_s17, 1  ;;  %p713_p5 = scmp.ge.s32.totalorder %s1074_s15, 1 }
   0x9   : > { %p1133_p4 = por %p1399_p1, %p40_p0  ;;  %p119_p7 = scmp.lt.s32.totalorder %s1074_s15, 3 }
   0xa   : > { %p1138_p6 = por %p112_p3, %p40_p0  ;;  %s1076_s21 = smov [#allocation5]  }
   0xb   : > { %s1403_s18 = scalar_select %p1133_p4, 1, 0 }
   0xc   : > { %s1404_s19 = scalar_select %p1138_p6, 1, 0 }
   0xd   : > { %p1143_p8 = pnand %p713_p5, %p119_p7  ;;  %s131_s22 = sshll.u32 %s1076_s21, 4  ;;  %s132_s22 = int_to_ptr.vmem [resolvable:$true] %s131_s22 }
   0xe   : > { %s1157_s24 = sadd.s32 1, %s1074_s15   ;;  %s27_s25 = sadd.s32 1, %s1070_s14 }
   0xf   : > { %s1405_s20 = scalar_select %p1143_p8, 1, 0 }
  0x10   : > { %p819_p9 = pneg %p1143_p8  ;;  %s24_s26 = ssub.s32 %s1074_s15, %s1157_s24 }
  0x11   : > { %s963_s27 = scalar_lea.vmem %s132_s22, 1024  ;;  %p971_p5 = scmp.lt.s32.totalorder %s132_s22, %s132_s22 }
  0x12   : > { %p1152_p11 = pnand %p819_p9, %p1399_p1  ;;  %p964_p13 = scmp.ne.s32.totalorder %s132_s22, %s963_s27 }
  0x13   : > { %p972_p7 = scmp.lt.s32.totalorder %s963_s27, %s963_s27 }
  0x14   : > { %p954_p12 = pneg %p1152_p11 }
  0x15   : > { %p973_p10 = por %p972_p7, %p971_p5 }
  0x16   : > { %p966_p0 = pnand %p964_p13, %p954_p12 }
  0x18   : > { %p967_p3 = pneg %p966_p0 }
  0x1a   : > { %p974_p2 = pnand %p973_p10, %p967_p3 }
  0x1c   : > { %977 = shalt.err (!%p974_p2)
}
  0x1d   : > { %s1077_s28 = smov 64   ;;  %s1078_s29 = smov 4  }
  0x1e   : > { %822 = dma.hbm_to_vmem [thread:$0]  (!%p1152_p11), %s1396_s1, 1024, %s132_s22, [#allocation6], %s1077_s28, %s1077_s28, %s1078_s29  }
  0x1f   : > { %p25_p2 = scmp.eq.s32.totalorder %s24_s26, 0  ;;  %p34_p9 = scmp.ne.s32.totalorder %s1070_s14, %s1066_s13 }
  0x20   : > { %p35_p10 = scmp.eq.s32.totalorder %s1074_s15, 0  ;;  %p832_p12 = scmp.lt.s32.totalorder %s1074_s15, 2 }
  0x21   : > { %s1177_s5 = scalar_select %p25_p2, %s1070_s14, %s27_s25  }
  0x22   : > { %p36_p13 = por %p35_p10, %p34_p9  ;;  %p1407_p0 = scmp.eq.s32.totalorder %s1124_s16, 1 }
  0x23   : > { %s148_s7 = sand.u32 1, %s1070_s14   ;;  %s745_s8 = sshll.u32 %s1074_s15, 10 }
  0x24   : > { %p1181_p3 = por %p1407_p0, %p34_p9  ;;  %s716_s9 = sshll.u32 %s148_s7, 6 }
  0x25   : > { %s1190_s17 = scalar_lea.hbm %s1395_s0, %s745_s8  ;;  %s152_s21 = scalar_lea.vmem [#allocation2], %s716_s9 }
  0x26   : > { %s1408_s6 = scalar_select %p1181_p3, 1, 0 }
  0x27   : > { %s159_s22 = sshll.u32 %s152_s21, 4  ;;  %p1192_p11 = pnand %p832_p12, %p36_p13  ;;  %s1196_s22 = int_to_ptr.vmem [resolvable:$true] %s159_s22 }
  0x28   : > { %s1198_s25 = scalar_lea.sflag [#allocation3], %s148_s7  ;;  %s978_s26 = scalar_lea.hbm %s1190_s17, 1024 }
  0x29   : > { %p979_p5 = scmp.ne.s32.totalorder %s1190_s17, %s978_s26  ;;  %p980_p7 = pneg %p1192_p11 }
  0x2a   : > { %s983_s4 = scalar_lea.hbm %s1395_s0, 2048  ;;  %p984_p10 = scmp.lt.s32.totalorder %s1190_s17, %s1395_s0 }
  0x2b   : > { %p981_p2 = pnand %p980_p7, %p979_p5  ;;  %p985_p12 = scmp.lt.s32.totalorder %s983_s4, %s978_s26 }
  0x2d   : > { %p982_p9 = pneg %p981_p2  ;;  %p986_p13 = por %p985_p12, %p984_p10 }
  0x2f   : > { %p987_p0 = pnand %p986_p13, %p982_p9 }
  0x31   : > { %990 = shalt.err (!%p987_p0)
}
  0x32   : > { %s991_s7 = scalar_lea.vmem %s1196_s22, 1024  ;;  %s1079_s10 = smov [#allocation2]  }
  0x33   : > { %p992_p1 = scmp.ne.s32.totalorder %s1196_s22, %s991_s7  ;;  %s996_s11 = sshll.u32 %s1079_s10, 4  ;;  %s997_s11 = int_to_ptr.vmem [resolvable:$false] %s996_s11 }
  0x34   : > { %s998_s21 = scalar_lea.vmem %s997_s11, 2048  ;;  %p999_p2 = scmp.lt.s32.totalorder %s1196_s22, %s997_s11 }
  0x35   : > { %p994_p6 = pnand %p992_p1, %p980_p7  ;;  %p1000_p3 = scmp.lt.s32.totalorder %s998_s21, %s991_s7 }
  0x37   : > { %p995_p5 = pneg %p994_p6  ;;  %p1001_p4 = por %p1000_p3, %p999_p2 }
  0x39   : > { %p1002_p8 = pnand %p1001_p4, %p995_p5 }
  0x3b   : > { %1005 = shalt.err (!%p1002_p8)
}
  0x3c   : > { %826 = dma.hbm_to_vmem [thread:$0]  (!%p1192_p11), %s1190_s17, 1024, %s1196_s22, %s1198_s25, %s1077_s28, %s1077_s28, %s1078_s29  }
  0x3d   : > { %p1410_p1 = scmp.ne.s32.totalorder %s1405_s20, 0 }
  0x3e   : > { %s1225_s26 = sand.u32 (!%p1410_p1), 1, %s1066_s13   ;;  %p1411_p4 = scmp.ne.s32.totalorder (!%p1410_p1), %s1403_s18, 0 }
  0x3f   : > { %171 = sbr.rel (%p1410_p1) target bundleno = 658 (0x292), region = 32  ;;  %s720_s27 = sshll.u32 (!%p1410_p1), %s1225_s26, 6 }
  0x40   : > { %s174_s30 = scalar_lea.sflag (!%p1410_p1), [#allocation3], %s1225_s26  ;;  %s1229_s4 = scalar_lea.vmem (!%p1410_p1), [#allocation2], %s720_s27 }
  0x44   : > { %1049 = dma.done.wait (%p1411_p4), %s174_s30, 1024  }
  0x45   : > { %1051 = vsyncadd (%p1411_p4), %s174_s30, 4294966272  ;;  %p1412_p6 = scmp.eq.s32.totalorder %s1124_s16, 0 }
  0x47   : > { %1053 = dma.done.wait (%p1412_p6), [#allocation6], 1024   ;;  %p1413_p8 = pmov %p1412_p6 }
  0x48   : > { %v872_v0 = vld [vmem:[#allocation5 + $0x38] sm:$0xff]   ;;  %v873_v1 = vld [vmem:[#allocation5 + $0x30] sm:$0xff]   ;;  %v874_v2 = vld [vmem:[#allocation5 + $0x28] sm:$0xff]   ;;  %s722_s28 = sshll.u32 %s1225_s26, 7  ;;  %s746_s17 = sshll.u32 %s1124_s16, 11 }
  0x49   : > { %1055 = vsyncadd (%p1413_p8), [#allocation6], 4294966272  ;;  %763 = vmatprep.subr.bf16.mxu0 %v872_v0  ;;  %795 = vmatprep.subr.bf16.mxu1 %v872_v0  ;;  %v875_v3 = vld [vmem:[#allocation5 + $0x20] sm:$0xff]   ;;  %v876_v6 = vld [vmem:[#allocation5 + $0x18] sm:$0xff]   ;;  %s1312_s29 = scalar_lea.vmem [#allocation7], %s722_s28  ;;  %s1348_s8 = scalar_lea.hbm %s1398_s3, %s746_s17 }
  0x4a   : > { %764 = vmatpush3.bf16.msra.mxu0 %v872_v0  ;;  %803 = vmatpush3.bf16.msra.mxu1 %v872_v0  ;;  %v880_v4 = vld [vmem:[%s1229_s4] sm:$0xff]   ;;  %v877_v7 = vld [vmem:[#allocation5 + $0x10] sm:$0xff]   ;;  %v878_v8 = vld [vmem:[#allocation5 + $0x8] sm:$0xff]   ;;  %s629_s22 = sshll.u32 %s1312_s29, 4  ;;  %s616_s16 = scalar_lea.sflag [#allocation4], %s1225_s26  ;;  %s1350_s22 = int_to_ptr.vmem [resolvable:$true] %s629_s22 }
  0x4b   : > { %765 = vmatprep.subr.bf16.mxu0 %v873_v1  ;;  %796 = vmatprep.subr.bf16.mxu1 %v873_v1  ;;  %v881_v5 = vld [vmem:[%s1229_s4 + $0x20] sm:$0xff]   ;;  %v882_v10 = vld [vmem:[%s1229_s4 + $0x8] sm:$0xff]   ;;  %v884_v12 = vld [vmem:[%s1229_s4 + $0x10] sm:$0xff]   ;;  %s1006_s9 = scalar_lea.vmem %s1350_s22, 2048  ;;  %p1414_p11 = scmp.ne.s32.totalorder %s1408_s6, 0 }
  0x4c   : > { %779 = vmatprep.mubr.bf16.mxu0 %v880_v4  ;;  %787 = vmatprep.mubr.bf16.mxu1 %v881_v5  ;;  %v879_v9 = vld [vmem:[#allocation5] sm:$0xff]   ;;  %v883_v11 = vld [vmem:[%s1229_s4 + $0x28] sm:$0xff]   ;;  %v886_v13 = vld [vmem:[%s1229_s4 + $0x30] sm:$0xff]   ;;  %p1007_p3 = scmp.ne.s32.totalorder %s1350_s22, %s1006_s9  ;;  %s1080_s7 = smov [#allocation7]  }
  0x4d   : > { %v885_v14 = vld [vmem:[%s1229_s4 + $0x18] sm:$0xff]   ;;  %v723_v16 = vld [vmem:[%s1397_s2] ss:$0 sm:$0xff]  ;;  %s1010_s10 = sshll.u32 %s1080_s7, 4  ;;  %s1011_s10 = int_to_ptr.vmem [resolvable:$false] %s1010_s10 }
  0x4e   : > { %766 = vmatpush3.bf16.msra.mxu0 %v873_v1  ;;  %804 = vmatpush3.bf16.msra.mxu1 %v873_v1  ;;  %v887_v15 = vld [vmem:[%s1229_s4 + $0x38] sm:$0xff]   ;;  %p1008_p7 = pnand %p1007_p3, %p1414_p11  ;;  %s1012_s11 = scalar_lea.vmem %s1011_s10, 4096 }
  0x4f   : > { %767 = vmatprep.subr.bf16.mxu0 %v874_v2  ;;  %797 = vmatprep.subr.bf16.mxu1 %v874_v2  ;;  %p1013_p10 = scmp.lt.s32.totalorder %s1350_s22, %s1011_s10  ;;  %p1014_p12 = scmp.lt.s32.totalorder %s1012_s11, %s1006_s9 }
  0x50   : > { %p1009_p9 = pneg %p1008_p7 }
  0x51   : > { %p1015_p13 = por %p1014_p12, %p1013_p10 }
  0x52   : > { %768 = vmatpush3.bf16.msra.mxu0 %v874_v2  ;;  %805 = vmatpush3.bf16.msra.mxu1 %v874_v2 }
  0x53   : > { %769 = vmatprep.subr.bf16.mxu0 %v875_v3  ;;  %798 = vmatprep.subr.bf16.mxu1 %v875_v3  ;;  %p1016_p0 = pnand %p1015_p13, %p1009_p9 }
  0x56   : > { %770 = vmatpush3.bf16.msra.mxu0 %v875_v3  ;;  %806 = vmatpush3.bf16.msra.mxu1 %v875_v3 }
  0x57   : > { %771 = vmatprep.subr.bf16.mxu0 %v876_v6  ;;  %799 = vmatprep.subr.bf16.mxu1 %v876_v6 }
  0x5a   : > { %772 = vmatpush3.bf16.msra.mxu0 %v876_v6  ;;  %807 = vmatpush3.bf16.msra.mxu1 %v876_v6 }
  0x5b   : > { %773 = vmatprep.subr.bf16.mxu0 %v877_v7  ;;  %800 = vmatprep.subr.bf16.mxu1 %v877_v7 }
  0x5e   : > { %774 = vmatpush3.bf16.msra.mxu0 %v877_v7  ;;  %808 = vmatpush3.bf16.msra.mxu1 %v877_v7 }
  0x5f   : > { %775 = vmatprep.subr.bf16.mxu0 %v878_v8  ;;  %801 = vmatprep.subr.bf16.mxu1 %v878_v8 }
  0x62   : > { %776 = vmatpush3.bf16.msra.mxu0 %v878_v8  ;;  %809 = vmatpush3.bf16.msra.mxu1 %v878_v8 }
  0x63   : > { %777 = vmatprep.subr.bf16.mxu0 %v879_v9  ;;  %802 = vmatprep.subr.bf16.mxu1 %v879_v9 }
  0x66   : > { %778 = vmatpush3.bf16.msra.mxu0 %v879_v9  ;;  %810 = vmatpush3.bf16.msra.mxu1 %v879_v9 }
  0x69   : > { %780 = vmatmul.mubr.bf16.vlgmr.msra.gmra.mxu0 %v882_v10  ;;  %788 = vmatmul.mubr.bf16.vlgmr.msra.gmra.mxu1 %v883_v11 }
  0x6a   : > { %783 = vmatprep.mubr.bf16.mxu0 %v884_v12  ;;  %791 = vmatprep.mubr.bf16.mxu1 %v886_v13 }
  0x71   : > { %784 = vmatmul.mubr.bf16.gmra.mxu0 %v885_v14  ;;  %792 = vmatmul.mubr.bf16.gmra.mxu1 %v887_v15 }
 0x129   : > { %v781_v17 = vpop.f32.mrf.mxu0  ;;  %v789_v18 = vpop.f32.mrf.mxu1 }
 0x12a   : > { %v385_v19 = vadd.f32 %v781_v17, %v723_v16  ;;  %v417_v20 = vadd.f32 %v789_v18, %v723_v16 }
 0x12b   : > { %v376_v21 = vpop.f32.mrf.mxu0  ;;  %v408_v22 = vpop.f32.mrf.mxu1 }
 0x12c   : > { %459 = vmax.xlane.f32.xlu0 %v417_v20  ;;  %443 = vmax.xlane.f32.xlu1 %v385_v19  ;;  %v377_v25 = vadd.f32 %v723_v16, %v376_v21  ;;  %v409_v30 = vadd.f32 %v723_v16, %v408_v22 }
 0x12d   : > { %v782_v23 = vpop.f32.mrf.mxu0  ;;  %v790_v24 = vpop.f32.mrf.mxu1 }
 0x12e   : > { %v388_v26 = vadd.f32 %v782_v23, %v723_v16  ;;  %v420_v31 = vadd.f32 %v790_v24, %v723_v16 }
 0x12f   : > { %v379_v27 = vpop.f32.mrf.mxu0  ;;  %v411_v28 = vpop.f32.mrf.mxu1 }
 0x130   : > { %445 = vmax.xlane.f32.xlu1 %v388_v26  ;;  %439 = vmax.xlane.f32.xlu0 %v377_v25  ;;  %v380_v34 = vadd.f32 %v723_v16, %v379_v27  ;;  %v412_v35 = vadd.f32 %v723_v16, %v411_v28 }
 0x131   : > { %v785_v29 = vpop.f32.mrf.mxu0  ;;  %v793_v33 = vpop.f32.mrf.mxu1 }
 0x132   : > { %v401_v38 = vadd.f32 %v785_v29, %v723_v16  ;;  %v1253_v47 = vadd.f32 %v793_v33, %v723_v16 }
 0x133   : > { %v392_v32 = vpop.f32.mrf.mxu0  ;;  %v424_v37 = vpop.f32.mrf.mxu1 }
 0x134   : > { %461 = vmax.xlane.f32.xlu1 %v420_v31  ;;  %455 = vmax.xlane.f32.xlu0 %v409_v30  ;;  %v393_v42 = vadd.f32 %v723_v16, %v392_v32  ;;  %v1250_v45 = vadd.f32 %v723_v16, %v424_v37 }
 0x135   : > { %v786_v36 = vpop.f32.mrf.mxu0  ;;  %v794_v41 = vpop.f32.mrf.mxu1 }
 0x136   : > { %v404_v39 = vadd.f32 %v786_v36, %v723_v16  ;;  %v1255_v48 = vadd.f32 %v794_v41, %v723_v16 }
 0x137   : > { %v395_v40 = vpop.f32.mrf.mxu0  ;;  %v427_v44 = vpop.f32.mrf.mxu1 }
 0x138   : > { %457 = vmax.xlane.f32.xlu1 %v412_v35  ;;  %441 = vmax.xlane.f32.xlu0 %v380_v34  ;;  %v396_v43 = vadd.f32 %v723_v16, %v395_v40  ;;  %v428_v46 = vadd.f32 %v723_v16, %v427_v44 }
 0x13c   : > { %453 = vmax.xlane.f32.xlu1 %v404_v39  ;;  %451 = vmax.xlane.f32.xlu0 %v401_v38 }
 0x140   : > { %449 = vmax.xlane.f32.xlu1 %v396_v43  ;;  %447 = vmax.xlane.f32.xlu0 %v393_v42 }
 0x144   : > { %465 = vmax.xlane.f32.xlu1 %v428_v46  ;;  %463 = vmax.xlane.f32.xlu0 %v1250_v45 }
 0x148   : > { %469 = vmax.xlane.f32.xlu1 %v1255_v48  ;;  %467 = vmax.xlane.f32.xlu0 %v1253_v47 }
 0x1b5   : > { %v460_v49 = vpop.xlane.xlu0 %459  ;;  %v444_v50 = vpop.xlane.xlu1 %443 }
 0x1b6   : > { %v1259_v51 = vsub.f32 %v385_v19, %v444_v50  ;;  %v1261_v52 = vsub.f32 %v417_v20, %v460_v49 }
 0x1b8   : > { %v491_v53 = vmul.f32 1.442695, %v1259_v51  ;;  %v507_v57 = vmul.f32 1.442695, %v1261_v52 }
 0x1b9   : > { %v446_v54 = vpop.xlane.xlu1 %445  ;;  %v440_v55 = vpop.xlane.xlu0 %439 }
 0x1ba   : > { %v1264_v56 = vsub.f32 %v388_v26, %v446_v54  ;;  %888 = vpow2.f32 %v491_v53  ;;  %v1267_v58 = vsub.f32 %v377_v25, %v440_v55 }
 0x1bc   : > { %v493_v59 = vmul.f32 1.442695, %v1264_v56  ;;  %v487_v0 = vmul.f32 1.442695, %v1267_v58 }
 0x1bd   : > { %v462_v60 = vpop.xlane.xlu1 %461  ;;  %v456_v61 = vpop.xlane.xlu0 %455 }
 0x1be   : > { %890 = vpow2.f32 %v493_v59  ;;  %v1270_v62 = vsub.f32 %v420_v31, %v462_v60  ;;  %v1272_v63 = vsub.f32 %v409_v30, %v456_v61 }
 0x1bf   : > { %892 = vpow2.f32 %v507_v57 }
 0x1c0   : > { %v509_v1 = vmul.f32 1.442695, %v1270_v62  ;;  %v503_v4 = vmul.f32 1.442695, %v1272_v63 }
 0x1c1   : > { %v458_v2 = vpop.xlane.xlu1 %457  ;;  %v442_v3 = vpop.xlane.xlu0 %441 }
 0x1c2   : > { %894 = vpow2.f32 %v509_v1  ;;  %v1277_v5 = vsub.f32 %v412_v35, %v458_v2  ;;  %v1279_v6 = vsub.f32 %v380_v34, %v442_v3 }
 0x1c3   : > { %896 = vpow2.f32 %v487_v0 }
 0x1c4   : > { %v489_v7 = vmul.f32 1.442695, %v1279_v6  ;;  %898 = vpow2.f32 %v503_v4  ;;  %v505_v10 = vmul.f32 1.442695, %v1277_v5 }
 0x1c5   : > { %v454_v8 = vpop.xlane.xlu1 %453  ;;  %v452_v9 = vpop.xlane.xlu0 %451 }
 0x1c6   : > { %v1283_v11 = vsub.f32 %v404_v39, %v454_v8  ;;  %v1285_v12 = vsub.f32 %v401_v38, %v452_v9  ;;  %900 = vpow2.f32 %v489_v7 }
 0x1c7   : > { %v889_v13 = vpop.eup %888  ;;  %902 = vpow2.f32 %v505_v10 }
 0x1c8   : > { %v499_v14 = vmul.f32 1.442695, %v1285_v12  ;;  %523 = vadd.xlane.f32.xlu0 %v889_v13  ;;  %v501_v17 = vmul.f32 1.442695, %v1283_v11 }
 0x1c9   : > { %v450_v15 = vpop.xlane.xlu1 %449  ;;  %v448_v16 = vpop.xlane.xlu0 %447 }
 0x1ca   : > { %v1289_v18 = vsub.f32 %v396_v43, %v450_v15  ;;  %v1291_v19 = vsub.f32 %v393_v42, %v448_v16  ;;  %904 = vpow2.f32 %v499_v14 }
 0x1cb   : > { %v891_v20 = vpop.eup %890  ;;  %906 = vpow2.f32 %v501_v17 }
 0x1cc   : > { %v893_v21 = vpop.eup %892  ;;  %v495_v22 = vmul.f32 1.442695, %v1291_v19  ;;  %525 = vadd.xlane.f32.xlu1 %v891_v20  ;;  %v497_v25 = vmul.f32 1.442695, %v1289_v18 }
 0x1cd   : > { %539 = vadd.xlane.f32.xlu0 %v893_v21  ;;  %v466_v23 = vpop.xlane.xlu1 %465  ;;  %v464_v24 = vpop.xlane.xlu0 %463 }
 0x1ce   : > { %v1295_v26 = vsub.f32 %v428_v46, %v466_v23  ;;  %v1298_v27 = vsub.f32 %v1250_v45, %v464_v24  ;;  %908 = vpow2.f32 %v495_v22 }
 0x1cf   : > { %v895_v28 = vpop.eup %894  ;;  %910 = vpow2.f32 %v497_v25 }
 0x1d0   : > { %v897_v29 = vpop.eup %896  ;;  %v511_v30 = vmul.f32 1.442695, %v1298_v27  ;;  %541 = vadd.xlane.f32.xlu1 %v895_v28  ;;  %v513_v33 = vmul.f32 1.442695, %v1295_v26 }
 0x1d1   : > { %519 = vadd.xlane.f32.xlu0 %v897_v29  ;;  %v470_v31 = vpop.xlane.xlu1 %469  ;;  %v468_v32 = vpop.xlane.xlu0 %467 }
 0x1d2   : > { %v1303_v34 = vsub.f32 %v1253_v47, %v468_v32  ;;  %v899_v35 = vpop.eup %898  ;;  %912 = vpow2.f32 %v511_v30  ;;  %v1306_v36 = vsub.f32 %v1255_v48, %v470_v31 }
 0x1d3   : > { %v901_v37 = vpop.eup %900  ;;  %914 = vpow2.f32 %v513_v33 }
 0x1d4   : > { %v515_v38 = vmul.f32 1.442695, %v1303_v34  ;;  %521 = vadd.xlane.f32.xlu1 %v901_v37  ;;  %v903_v39 = vpop.eup %902  ;;  %v517_v40 = vmul.f32 1.442695, %v1306_v36 }
 0x1d5   : > { %535 = vadd.xlane.f32.xlu0 %v899_v35 }
 0x1d6   : > { %916 = vpow2.f32 %v515_v38 }
 0x1d7   : > { %v905_v41 = vpop.eup %904  ;;  %918 = vpow2.f32 %v517_v40 }
 0x1d8   : > { %537 = vadd.xlane.f32.xlu1 %v903_v39  ;;  %v907_v42 = vpop.eup %906 }
 0x1d9   : > { %531 = vadd.xlane.f32.xlu0 %v905_v41 }
 0x1db   : > { %v909_v43 = vpop.eup %908 }
 0x1dc   : > { %533 = vadd.xlane.f32.xlu1 %v907_v42  ;;  %v911_v44 = vpop.eup %910 }
 0x1dd   : > { %527 = vadd.xlane.f32.xlu0 %v909_v43 }
 0x1df   : > { %v913_v45 = vpop.eup %912 }
 0x1e0   : > { %529 = vadd.xlane.f32.xlu1 %v911_v44  ;;  %v915_v46 = vpop.eup %914 }
 0x1e1   : > { %543 = vadd.xlane.f32.xlu0 %v913_v45 }
 0x1e3   : > { %v917_v47 = vpop.eup %916 }
 0x1e4   : > { %545 = vadd.xlane.f32.xlu1 %v915_v46  ;;  %v919_v48 = vpop.eup %918 }
 0x1e5   : > { %547 = vadd.xlane.f32.xlu0 %v917_v47 }
 0x1e8   : > { %549 = vadd.xlane.f32.xlu1 %v919_v48 }
 0x251   : > { %v524_v49 = vpop.xlane.xlu0 %523 }
 0x252   : > { %920 = vlog2.f32 %v524_v49 }
 0x255   : > { %v526_v50 = vpop.xlane.xlu1 %525 }
 0x256   : > { %922 = vlog2.f32 %v526_v50  ;;  %v540_v53 = vpop.xlane.xlu0 %539 }
 0x257   : > { %924 = vlog2.f32 %v540_v53 }
 0x259   : > { %v542_v54 = vpop.xlane.xlu1 %541 }
 0x25a   : > { %926 = vlog2.f32 %v542_v54  ;;  %v520_v55 = vpop.xlane.xlu0 %519 }
 0x25b   : > { %928 = vlog2.f32 %v520_v55 }
 0x25d   : > { %v522_v57 = vpop.xlane.xlu1 %521 }
 0x25e   : > { %v536_v59 = vpop.xlane.xlu0 %535  ;;  %930 = vlog2.f32 %v522_v57 }
 0x25f   : > { %v921_v60 = vpop.eup %920  ;;  %932 = vlog2.f32 %v536_v59 }
 0x260   : > { %v556_v61 = vmul.f32 0.6931472, %v921_v60 }
 0x261   : > { %v538_v0 = vpop.xlane.xlu1 %537 }
 0x262   : > { %v532_v1 = vpop.xlane.xlu0 %531  ;;  %v585_v3 = vsub.f32 %v1259_v51, %v556_v61  ;;  %934 = vlog2.f32 %v538_v0 }
 0x263   : > { %v923_v2 = vpop.eup %922  ;;  %936 = vlog2.f32 %v532_v1 }
 0x264   : > { %v925_v4 = vpop.eup %924  ;;  %v558_v7 = vmul.f32 0.6931472, %v923_v2  ;;  %601 = vst [vmem:[%s1312_s29 + $0x10] sm:$0xff] %v585_v3 }
 0x265   : > { %v572_v8 = vmul.f32 0.6931472, %v925_v4  ;;  %v534_v10 = vpop.xlane.xlu1 %533 }
 0x266   : > { %v586_v9 = vsub.f32 %v1264_v56, %v558_v7  ;;  %v528_v13 = vpop.xlane.xlu0 %527  ;;  %938 = vlog2.f32 %v534_v10 }
 0x267   : > { %v927_v14 = vpop.eup %926  ;;  %v593_v15 = vsub.f32 %v1261_v52, %v572_v8  ;;  %940 = vlog2.f32 %v528_v13 }
 0x268   : > { %v929_v51 = vpop.eup %928  ;;  %602 = vst [vmem:[%s1312_s29 + $0x18] sm:$0xff] %v586_v9  ;;  %v574_v16 = vmul.f32 0.6931472, %v927_v14 }
 0x269   : > { %609 = vst [vmem:[%s1312_s29 + $0x50] sm:$0xff] %v593_v15  ;;  %v552_v17 = vmul.f32 0.6931472, %v929_v51  ;;  %v530_v21 = vpop.xlane.xlu1 %529 }
 0x26a   : > { %v594_v20 = vsub.f32 %v1270_v62, %v574_v16  ;;  %v544_v22 = vpop.xlane.xlu0 %543  ;;  %942 = vlog2.f32 %v530_v21 }
 0x26b   : > { %v583_v56 = vsub.f32 %v1267_v58, %v552_v17  ;;  %v931_v23 = vpop.eup %930  ;;  %944 = vlog2.f32 %v544_v22 }
 0x26c   : > { %610 = vst [vmem:[%s1312_s29 + $0x58] sm:$0xff] %v594_v20  ;;  %v933_v52 = vpop.eup %932  ;;  %v554_v24 = vmul.f32 0.6931472, %v931_v23 }
 0x26d   : > { %599 = vst [vmem:[%s1312_s29] sm:$0xff] %v583_v56  ;;  %v568_v25 = vmul.f32 0.6931472, %v933_v52  ;;  %v546_v28 = vpop.xlane.xlu1 %545 }
 0x26e   : > { %v548_v29 = vpop.xlane.xlu0 %547  ;;  %v584_v30 = vsub.f32 %v1279_v6, %v554_v24  ;;  %946 = vlog2.f32 %v546_v28 }
 0x26f   : > { %v935_v62 = vpop.eup %934  ;;  %v591_v58 = vsub.f32 %v1272_v63, %v568_v25  ;;  %948 = vlog2.f32 %v548_v29 }
 0x270   : > { %v937_v31 = vpop.eup %936  ;;  %600 = vst [vmem:[%s1312_s29 + $0x8] sm:$0xff] %v584_v30  ;;  %v570_v32 = vmul.f32 0.6931472, %v935_v62 }
 0x271   : > { %607 = vst [vmem:[%s1312_s29 + $0x40] sm:$0xff] %v591_v58  ;;  %v564_v33 = vmul.f32 0.6931472, %v937_v31  ;;  %v550_v35 = vpop.xlane.xlu1 %549 }
 0x272   : > { %v592_v37 = vsub.f32 %v1277_v5, %v570_v32  ;;  %950 = vlog2.f32 %v550_v35 }
 0x273   : > { %v939_v38 = vpop.eup %938  ;;  %v589_v6 = vsub.f32 %v1285_v12, %v564_v33 }
 0x274   : > { %v941_v39 = vpop.eup %940  ;;  %608 = vst [vmem:[%s1312_s29 + $0x48] sm:$0xff] %v592_v37  ;;  %v566_v40 = vmul.f32 0.6931472, %v939_v38 }
 0x275   : > { %605 = vst [vmem:[%s1312_s29 + $0x30] sm:$0xff] %v589_v6  ;;  %v560_v63 = vmul.f32 0.6931472, %v941_v39 }
 0x276   : > { %v590_v41 = vsub.f32 %v1283_v11, %v566_v40 }
 0x277   : > { %v943_v42 = vpop.eup %942  ;;  %v587_v43 = vsub.f32 %v1291_v19, %v560_v63 }
 0x278   : > { %v945_v44 = vpop.eup %944  ;;  %606 = vst [vmem:[%s1312_s29 + $0x38] sm:$0xff] %v590_v41  ;;  %v562_v5 = vmul.f32 0.6931472, %v943_v42 }
 0x279   : > { %603 = vst [vmem:[%s1312_s29 + $0x20] sm:$0xff] %v587_v43  ;;  %v576_v12 = vmul.f32 0.6931472, %v945_v44 }
 0x27a   : > { %v588_v45 = vsub.f32 %v1289_v18, %v562_v5 }
 0x27b   : > { %v947_v46 = vpop.eup %946  ;;  %v595_v47 = vsub.f32 %v1298_v27, %v576_v12 }
 0x27c   : > { %v949_v48 = vpop.eup %948  ;;  %604 = vst [vmem:[%s1312_s29 + $0x28] sm:$0xff] %v588_v45  ;;  %v578_v11 = vmul.f32 0.6931472, %v947_v46 }
 0x27d   : > { %611 = vst [vmem:[%s1312_s29 + $0x60] sm:$0xff] %v595_v47  ;;  %v580_v19 = vmul.f32 0.6931472, %v949_v48 }
 0x27e   : > { %v596_v49 = vsub.f32 %v1295_v26, %v578_v11 }
 0x27f   : > { %v951_v50 = vpop.eup %950  ;;  %v597_v53 = vsub.f32 %v1303_v34, %v580_v19 }
 0x280   : > { %612 = vst [vmem:[%s1312_s29 + $0x68] sm:$0xff] %v596_v49  ;;  %v582_v18 = vmul.f32 0.6931472, %v951_v50 }
 0x281   : > { %613 = vst [vmem:[%s1312_s29 + $0x70] sm:$0xff] %v597_v53 }
 0x282   : > { %v598_v26 = vsub.f32 %v1306_v36, %v582_v18 }
 0x284   : > { %614 = vst [vmem:[%s1312_s29 + $0x78] sm:$0xff] %v598_v26 }
 0x285   : > { %1019 = shalt.err (!%p1016_p0)
}
 0x286   : > { %s1020_s21 = scalar_lea.hbm %s1348_s8, 2048  ;;  %s1024_s4 = scalar_lea.hbm %s1398_s3, 4096 }
 0x287   : > { %p1021_p5 = scmp.ne.s32.totalorder %s1348_s8, %s1020_s21  ;;  %p1025_p4 = scmp.lt.s32.totalorder %s1348_s8, %s1398_s3 }
 0x288   : > { %p1026_p6 = scmp.lt.s32.totalorder %s1024_s4, %s1020_s21 }
 0x289   : > { %p1022_p2 = pnand %p1021_p5, %p1414_p11 }
 0x28a   : > { %p1027_p8 = por %p1026_p6, %p1025_p4 }
 0x28b   : > { %p1023_p1 = pneg %p1022_p2 }
 0x28d   : > { %p1028_p3 = pnand %p1027_p8, %p1023_p1 }
 0x28f   : > { %1031 = shalt.err (!%p1028_p3)
}
 0x290   : > { %s1081_s28 = smov 128   ;;  %s1082_s29 = smov 8  }
 0x291   : > { %817 = dma.vmem_to_hbm [thread:$0]  (%p1414_p11), %s1350_s22, 2048, %s1348_s8, %s616_s16, %s1081_s28, %s1081_s28, %s1082_s29  }
 0x292 PF: > { %s644_s17 = sand.u32 1, %s1062_s12   ;;  %p1415_p7 = scmp.ne.s32.totalorder %s1404_s19, 0 }
 0x293   : > { %p1416_p9 = scmp.ge.s32.totalorder %s1074_s15, 2  ;;  %s645_s23 = scalar_lea.sflag [#allocation4], %s644_s17 }
 0x295   : > { %p828_p10 = pnand %p1416_p9, %p1415_p7 }
 0x297   : > { %p829_p12 = pneg %p828_p10 }
 0x299   : > { %1057 = dma.done.wait (%p829_p12), %s645_s23, 2048  }
 0x29a   : > { %1059 = vsyncadd (%p829_p12), %s645_s23, 4294965248  ;;  %p17_p13 = scmp.ge.s32.totalorder %s1157_s24, 4   ;;  %s1417_s12 = smov %s1066_s13 }
 0x29b   : > { %s1418_s13 = smov %s1070_s14  ;;  %s1419_s14 = smov %s1177_s5 }
 0x29c   : > { %s1420_s15 = smov %s1157_s24  ;;  %19 = sbr.rel (!%p17_p13) target bundleno = 6 (0x6), region = 81 }
 0x2a1   :  { %650 = vsyncpa [#allocation3], 1 }
 0x2a2   :  { %652 = vsyncpa [#allocation3 + $0x1], 1 }
 0x2a3   :  { %653 = vsyncpa [#allocation6], 1 }
 0x2a4   :  { %654 = vsyncpa [#allocation4], 1 }
 0x2a5   :  { %656 = vsyncpa [#allocation4 + $0x1], 1 }

</bundles_post_ra>
